<compile_context>
chip_gen: v5e
topology: v5e:2x2
jax: 0.10.0
libtpu: 0.0.40
codegen_flags: <defaults>
</compile_context>

<pallas_src>
import jax
import jax.numpy as jnp
from jax import lax
from jax.experimental import pallas as pl
from jax.experimental.pallas import tpu as pltpu


# ---------------------------------------------------------------------------
# Pallas kernel: disparity regression over a lane-dense flattened-H*W axis.
# ---------------------------------------------------------------------------
def _disparity_kernel(x_ref, o_ref):
    # x_ref: (D, T) VMEM tile (batch dim squeezed); o_ref: (1, T).
    x = x_ref[...].astype(jnp.float32)                      # f32 accumulation
    d = x_ref.shape[0]
    # Disparity weights built once as a tiny (D, 1) column and broadcast over
    # the lane axis (no full-block iota, no per-element s32->f32 convert).
    disp = lax.broadcasted_iota(jnp.int32, (d, 1), 0).astype(jnp.float32)
    o_ref[...] = jnp.sum(x * disp, axis=0, keepdims=True).astype(o_ref.dtype)


def _choose_spatial_tile(d, hw, itemsize,
                         vmem_budget_bytes=12 * 1024 * 1024,
                         max_tile=8192):
    """Lane-dense tile T (multiple of 128) sized so the double-buffered (D, T)
    input stays within a conservative VMEM budget on v5e / v6e / v7x."""
    t_budget = (vmem_budget_bytes // (2 * d * itemsize)) // 128 * 128
    t_budget = max(128, t_budget)
    hw_ceil = pl.cdiv(hw, 128) * 128          # never tile wider than needed
    return max(128, min(t_budget, max_tile, hw_ceil))


def disparity_regression(x):
    """x: (N, D, H, W) -> (N, 1, H, W); weighted sum over D with weights 0..D-1."""
    N, D, H, W = x.shape
    HW = H * W
    itemsize = jnp.dtype(x.dtype).itemsize
    T = _choose_spatial_tile(D, HW, itemsize)
    HW_pad = pl.cdiv(HW, T) * T

    # Flatten spatial dims so H*W is the lane axis (dense, unmasked vst).
    xf = x.reshape(N, D, HW)
    if HW_pad != HW:
        # Zero padding contributes 0 to the weighted sum; sliced off below.
        xf = jnp.pad(xf, ((0, 0), (0, 0), (0, HW_pad - HW)))

    grid = (N, HW_pad // T)
    out = pl.pallas_call(
        _disparity_kernel,
        out_shape=jax.ShapeDtypeStruct((N, 1, HW_pad), x.dtype),
        grid_spec=pltpu.PrefetchScalarGridSpec(
            num_scalar_prefetch=0,
            grid=grid,
            in_specs=[pl.BlockSpec((None, D, T), lambda n, t: (n, 0, t))],
            out_specs=pl.BlockSpec((None, 1, T), lambda n, t: (n, 0, t)),
        ),
        compiler_params=pltpu.CompilerParams(
            dimension_semantics=("parallel", "parallel"),
            vmem_limit_bytes=32 * 1024 * 1024,
        ),
    )(xf)
    return out[:, :, :HW].reshape(N, 1, H, W)


# ---------------------------------------------------------------------------
# Rest of Head.forward in plain JAX (dense ops best left to XLA).
# ---------------------------------------------------------------------------
def _conv3x3_refl(x, w, b):
    # ReflectionPad2d(1) + 3x3 valid conv (NCHW / OIHW), as in Conv3x3.
    xp = jnp.pad(x, ((0, 0), (0, 0), (1, 1), (1, 1)), mode="reflect")
    y = lax.conv_general_dilated(
        xp, w, window_strides=(1, 1), padding="VALID",
        dimension_numbers=("NCHW", "OIHW", "NCHW"))
    return y + b[None, :, None, None]


def _nearest_resize(x, h, w):
    # F.interpolate(..., size=[h, w]) with default mode='nearest'.
    _, _, H, W = x.shape
    hi = (jnp.arange(h) * H) // h
    wi = (jnp.arange(w) * W) // w
    return x[:, :, hi[:, None], wi[None, :]]


def head_probability_cost(params, x, *, height, width):
    # TODO(synk): Conv3x3 / ReLU / nearest-resize / spatial softmax run as
    # plain XLA ops; only the disparity regression is a Pallas kernel.
    out = jax.nn.relu(_conv3x3_refl(x, params["w1"], params["b1"]))
    out = jax.nn.relu(_conv3x3_refl(out, params["w1"], params["b1"]))  # conv_1 reused, as in PyTorch
    disp = _conv3x3_refl(out, params["w2"], params["b2"])
    disp = _nearest_resize(disp, height, width)
    bs, c, h, w = disp.shape
    prob = jax.nn.softmax(disp.reshape(bs, c, h * w), axis=-1)
    return prob.reshape(bs, c, h, w)


def head_forward(params, x, *, height, width):
    prob = head_probability_cost(params, x, height=height, width=width)
    return disparity_regression(prob)


def _disparity_regression_ref(x):
    D = x.shape[1]
    disp = jnp.arange(D, dtype=jnp.float32).reshape(1, D, 1, 1)
    return jnp.sum(x.astype(jnp.float32) * disp, axis=1, keepdims=True).astype(x.dtype)


if __name__ == "__main__":
    key = jax.random.PRNGKey(0)
    N, C, Hin, Win = 2, 4, 8, 8
    maxdisp, Hout, Wout = 8, 16, 16
    kx, k1, k2, k3, k4 = jax.random.split(key, 5)
    x = jax.random.normal(kx, (N, C, Hin, Win), dtype=jnp.float32)
    params = {
        "w1": 0.1 * jax.random.normal(k1, (C, C, 3, 3), dtype=jnp.float32),
        "b1": 0.1 * jax.random.normal(k2, (C,), dtype=jnp.float32),
        "w2": 0.1 * jax.random.normal(k3, (maxdisp, C, 3, 3), dtype=jnp.float32),
        "b2": 0.1 * jax.random.normal(k4, (maxdisp,), dtype=jnp.float32),
    }

    # Full Head forward (Pallas kernel does the final disparity regression).
    prob = head_probability_cost(params, x, height=Hout, width=Wout)
    out = jax.block_until_ready(disparity_regression(prob))
    assert out.shape == (N, 1, Hout, Wout)
    ref = _disparity_regression_ref(prob)
    assert jnp.allclose(out, ref, atol=1e-5, rtol=1e-5)

    # Also exercise a ragged spatial extent (H*W not a multiple of 128).
    x2 = jax.nn.softmax(
        jax.random.normal(key, (2, 4, 10, 12), dtype=jnp.float32), axis=1)
    out2 = jax.block_until_ready(disparity_regression(x2))
    assert jnp.allclose(out2, _disparity_regression_ref(x2), atol=1e-5, rtol=1e-5)

    print("KERNEL_OK")
</pallas_src>

<mosaic_0001>
module attributes {stable_mosaic.version = 11 : i64} {
  func.func @_disparity_kernel(%arg0: i32, %arg1: i32, %arg2: memref<1x8x256xf32, #tpu.memory_space<vmem>>, %arg3: memref<1x1x256xf32, #tpu.memory_space<vmem>>) attributes {dimension_semantics = [#tpu.dimension_semantics<parallel>, #tpu.dimension_semantics<parallel>], iteration_bounds = array<i64: 2, 1>, scalar_prefetch = 0 : i64, scratch_operands = 0 : i64, tpu.core_type = #tpu.core_type<tc>, window_params = [{transform_indices = @transform_0, window_bounds = array<i64: 1, 8, 256>}, {transform_indices = @transform_1, window_bounds = array<i64: 1, 1, 256>}]} {
    %c0 = arith.constant 0 : index
    %c0_0 = arith.constant 0 : index
    %c0_1 = arith.constant 0 : index
    %0 = vector.load %arg2[%c0, %c0_0, %c0_1] : memref<1x8x256xf32, #tpu.memory_space<vmem>>, vector<1x8x256xf32>
    %1 = vector.shape_cast %0 : vector<1x8x256xf32> to vector<8x256xf32>
    %2 = tpu.iota {dimensions = array<i32: 0>} : vector<8x1xi32>
    %3 = arith.sitofp %2 : vector<8x1xi32> to vector<8x1xf32>
    %4 = vector.broadcast %3 : vector<8x1xf32> to vector<8x256xf32>
    %5 = arith.mulf %1, %4 : vector<8x256xf32>
    %cst = arith.constant dense<0.000000e+00> : vector<256xf32>
    %6 = vector.multi_reduction <add>, %5, %cst [0] : vector<8x256xf32> to vector<256xf32>
    %7 = vector.shape_cast %6 : vector<256xf32> to vector<1x256xf32>
    %c0_2 = arith.constant 0 : index
    %c0_3 = arith.constant 0 : index
    %c0_4 = arith.constant 0 : index
    %8 = vector.load %arg3[%c0_2, %c0_3, %c0_4] : memref<1x1x256xf32, #tpu.memory_space<vmem>>, vector<1x1x256xf32>
    %9 = vector.shape_cast %8 : vector<1x1x256xf32> to vector<1x256xf32>
    %10 = vector.shape_cast %7 : vector<1x256xf32> to vector<1x1x256xf32>
    tpu.vector_store %arg3[%c0_2, %c0_3, %c0_4], %10 {strides = array<i32>} : memref<1x1x256xf32, #tpu.memory_space<vmem>>, vector<1x1x256xf32>,
    return
  }
  func.func @transform_0(%arg0: i32, %arg1: i32) -> (i32, i32, i32) {
    %c0_i32 = arith.constant 0 : i32
    %c0_i32_0 = arith.constant 0 : i32
    return %arg0, %c0_i32, %arg1 : i32, i32, i32
  }
  func.func @transform_1(%arg0: i32, %arg1: i32) -> (i32, i32, i32) {
    %c0_i32 = arith.constant 0 : i32
    %c0_i32_0 = arith.constant 0 : i32
    return %arg0, %c0_i32, %arg1 : i32, i32, i32
  }
}

</mosaic_0001>

<bundles_post_ra>
// kernel: tpu_custom_call.1
= control target key start
LH: loop header
LB: loop body
LE: loop exit
PB: predicated region body
PF: predicated region fallthrough
CT: control target
= control target key end

     0   :  { %6 = vsyncpa [#allocation3], 0  ;;  %s608_s0 = inlined_call_operand.hbm [shape: f32[2,8,256], index: 0, kind: input, shape index: {}]   ;;  %s609_s1 = inlined_call_operand.hbm [shape: f32[2,1,256], index: 1, kind: output, shape index: {}]  }
   0x1   :  { %8 = vsyncpa [#allocation3 + $0x1], 0 }
   0x2   :  { %9 = vsyncpa [#allocation4], 0 }
   0x3   :  { %11 = vsyncpa [#allocation4 + $0x1], 0  ;;  %s487_s6 = smov 0   ;;  %s489_s7 = smov 0  }
   0x4   :  { %s491_s8 = smov 0   ;;  %s493_s9 = smov 0  }
   0x5   :  { %s495_s10 = smov 0   ;;  %s497_s11 = smov 0  }
   0x6 LB: > { %s286_s12 = sadd.s32 4294967295, %s475_s11   ;;  %s287_s13 = sadd.s32 4294967294, %s475_s11   ;;  %s475_s11 = sphi %s497_s11, %s17_s11   ;;  %s471_s10 = sphi %s495_s10, %s618_s10   ;;  %s467_s9 = sphi %s493_s9, %s617_s9   ;;  %s463_s8 = sphi %s491_s8, %s616_s8   ;;  %s459_s7 = sphi %s489_s7, %s615_s7   ;;  %s455_s6 = sphi %s487_s6, %s614_s6  }
   0x7   : > { %s29_s14 = sadd.s32 1, %s471_s10  ;;  %s38_s15 = sadd.s32 1, %s463_s8 }
   0x8   : > { %p31_p0 = scmp.ge.s32.totalorder %s29_s14, 2  ;;  %p45_p1 = scmp.ne.s32.totalorder %s463_s8, %s459_s7 }
   0x9   : > { %p46_p2 = scmp.eq.s32.totalorder %s475_s11, 0  ;;  %p51_p3 = scmp.ne.s32.totalorder %s459_s7, %s455_s6 }
   0xa   : > { %s620_s14 = smov (%p31_p0, %s29_s14), 0  ;;  %p52_p5 = scmp.eq.s32.totalorder %s286_s12, 0 }
   0xb   : > { %p528_p4 = por %p46_p2, %p45_p1  ;;  %s33_s17 = ssub.s32 %s471_s10, %s620_s14 }
   0xc   : > { %p77_p6 = scmp.eq.s32.totalorder %s286_s12, 1  ;;  %p36_p7 = scmp.eq.s32.totalorder %s33_s17, 0 }
   0xd   : > { %p534_p8 = por %p52_p5, %p51_p3  ;;  %p83_p10 = scmp.eq.s32.totalorder %s287_s13, 1 }
   0xe   : > { %p538_p9 = por %p77_p6, %p45_p1  ;;  %p289_p12 = scmp.ge.s32.totalorder %s475_s11, 2 }
   0xf   : > { %s543_s20 = scalar_select %p36_p7, %s463_s8, %s38_s15  }
  0x10   : > { %p545_p11 = por %p83_p10, %p51_p3  ;;  %p313_p13 = scmp.lt.s32.totalorder %s475_s11, 2 }
  0x11   : > { %s103_s22 = sand.u32 1, %s463_s8   ;;  %s300_s24 = sshll.u32 %s471_s10, 4 }
  0x12   : > { %s290_s23 = sshll.u32 %s103_s22, 4  ;;  %s114_s27 = scalar_lea.hbm %s608_s0, %s300_s24 }
  0x13   : > { %s107_s28 = scalar_lea.vmem [#allocation2], %s290_s23  ;;  %s116_s30 = sshll.u32 %s114_s27, 4  ;;  %s117_s30 = int_to_ptr.hbm [resolvable:$true] %s116_s30 }
  0x14   : > { %s118_s29 = sshll.u32 %s107_s28, 4  ;;  %p306_p0 = pnand %p313_p13, %p528_p4  ;;  %s119_s29 = int_to_ptr.vmem [resolvable:$true] %s118_s29 }
  0x15   : > { %p293_p1 = scmp.ge.s32.totalorder %s475_s11, 1  ;;  %p123_p2 = scmp.lt.s32.totalorder %s475_s11, 3 }
  0x16   : > { %s104_s2 = scalar_lea.sflag [#allocation3], %s103_s22 }
  0x17   : > { %308 = dma.hbm_to_vmem [thread:$0]  (!%p306_p0), %s117_s30, 256, %s119_s29, %s104_s2  }
  0x18   : > { %p124_p3 = pnand %p293_p1, %p123_p2 }
  0x19   : > { %s561_s3 = sand.u32 (!%p124_p3), 1, %s459_s7  }
  0x1a   : > { %127 = sbr.rel (%p124_p3) target bundleno = 58 (0x3a), region = 24  ;;  %s294_s4 = sshll.u32 (!%p124_p3), %s561_s3, 4 }
  0x1b   : > { %s130_s5 = scalar_lea.sflag (!%p124_p3), [#allocation3], %s561_s3  ;;  %s133_s12 = scalar_lea.vmem (!%p124_p3), [#allocation2], %s294_s4 }
  0x1f   : > { %446 = dma.done.wait (%p534_p8), %s130_s5, 256  }
  0x20   : > { %448 = vsyncadd (%p534_p8), %s130_s5, 4294967040  ;;  %v157_v0 = vlaneseq  ;;  %v155_v3 = vld [vmem:[%s133_s12] sm:$0xff]  ;;  %v156_v4 = vld [vmem:[%s133_s12 + $0x8] sm:$0xff]  ;;  %s295_s13 = sshll.u32 %s561_s3, 1  ;;  %s297_s15 = sshll.u32 %s467_s9, 1  ;;  %vm177_vm0 = vcmask 1040384  }
  0x21   : > { %s198_s18 = scalar_lea.hbm %s609_s1, %s297_s15  ;;  %s152_s22 = scalar_lea.vmem [#allocation5], %s295_s13 }
  0x22   : > { %v158_v1 = vshrl.u32 %v157_v0, 7  ;;  %s200_s23 = sshll.u32 %s152_s22, 4  ;;  %s202_s24 = sshll.u32 %s198_s18, 4  ;;  %vm182_vm1 = vcmp.lt.s32.totalorder %v157_v0, 256  ;;  %s201_s23 = int_to_ptr.vmem [resolvable:$true] %s200_s23  ;;  %s203_s24 = int_to_ptr.hbm [resolvable:$true] %s202_s24 }
  0x23   : > { %s186_s9 = scalar_lea.sflag [#allocation4], %s561_s3  ;;  %s407_s25 = sshra.s32 %s203_s24, 4  ;;  %s408_s25 = int_to_ptr.hbm [resolvable:$true] %s407_s25 }
  0x24   : > { %v159_v2 = vcvt.s32.f32 %v158_v1  ;;  %s409_s26 = scalar_lea.hbm %s408_s25, 2  ;;  %s413_s29 = scalar_lea.hbm %s609_s1, 4 }
  0x25   : > { %p410_p4 = scmp.ne.s32.totalorder %s408_s25, %s409_s26  ;;  %p414_p7 = scmp.lt.s32.totalorder %s408_s25, %s609_s1 }
  0x26   : > { %v160_v5 = vmul.f32 %v159_v2, %v155_v3  ;;  %v161_v6 = vmul.f32 %v159_v2, %v156_v4  ;;  %p415_p8 = scmp.lt.s32.totalorder %s413_s29, %s409_s26 }
  0x27   : > { %p411_p5 = pnand %p410_p4, %p538_p9 }
  0x28   : > { %v162_v7 = vrot.slane %v160_v5, 4  ;;  %v168_v8 = vrot.slane %v161_v6, 4  ;;  %p416_p10 = por %p415_p8, %p414_p7 }
  0x29   : > { %p412_p6 = pneg %p411_p5 }
  0x2a   : > { %v163_v9 = vadd.f32 %v162_v7, %v160_v5  ;;  %v169_v10 = vadd.f32 %v168_v8, %v161_v6 }
  0x2b   : > { %p417_p13 = pnand %p416_p10, %p412_p6 }
  0x2c   : > { %v164_v11 = vrot.slane %v163_v9, 2  ;;  %v170_v12 = vrot.slane %v169_v10, 2 }
  0x2e   : > { %v165_v13 = vadd.f32 %v164_v11, %v163_v9  ;;  %v171_v14 = vadd.f32 %v170_v12, %v169_v10 }
  0x30   : > { %v166_v15 = vrot.slane %v165_v13, 1  ;;  %v172_v16 = vrot.slane %v171_v14, 1 }
  0x32   : > { %v167_v17 = vadd.f32 %v166_v15, %v165_v13  ;;  %v173_v18 = vadd.f32 %v172_v16, %v171_v14 }
  0x34   : > { %v176_v19 = vrot.slane %v173_v18, 7 }
  0x36   : > { %v178_v20 = vsel %vm177_vm0, %v167_v17, %v176_v19 }
  0x37   : > { %184 = vst.msk [vmem:[%s152_s22] sm:$0x3] %vm182_vm1, %v178_v20 }
  0x38   : > { %420 = shalt.err (!%p417_p13)
}
  0x39   : > { %303 = dma.vmem_to_hbm [thread:$0]  (%p538_p9), %s201_s23, 32, %s203_s24, %s186_s9  }
  0x3a PF: > { %s214_s3 = sand.u32 1, %s455_s6   ;;  %p310_p0 = pnand %p289_p12, %p545_p11 }
  0x3b   : > { %s215_s4 = scalar_lea.sflag [#allocation4], %s214_s3 }
  0x3c   : > { %p311_p1 = pneg %p310_p0 }
  0x3e   : > { %450 = dma.done.wait (%p311_p1), %s215_s4, 32  }
  0x3f   : > { %452 = vsyncadd (%p311_p1), %s215_s4, 4294967264  ;;  %s17_s11 = sadd.s32 1, %s475_s11   ;;  %s614_s6 = smov %s459_s7 }
  0x40   : > { %p14_p2 = scmp.ge.s32.totalorder %s17_s11, 4   ;;  %s615_s7 = smov %s463_s8 }
  0x41   : > { %s616_s8 = smov %s543_s20  ;;  %s617_s9 = smov %s471_s10 }
  0x42   : > { %s618_s10 = smov %s620_s14  ;;  %16 = sbr.rel (!%p14_p2) target bundleno = 6 (0x6), region = 69 }
  0x47   :  { %221 = vsyncpa [#allocation3], 1 }
  0x48   :  { %223 = vsyncpa [#allocation3 + $0x1], 1 }
  0x49   :  { %224 = vsyncpa [#allocation4], 1 }
  0x4a   :  { %226 = vsyncpa [#allocation4 + $0x1], 1 }

</bundles_post_ra>
